<compile_context>
chip_gen: v7x
topology: tpu7x:2x2x1
jax: 0.10.0
libtpu: 0.0.40
codegen_flags: <defaults>
</compile_context>

<pallas_src>
import numpy as np
import jax
import jax.numpy as jnp
from jax.experimental import pallas as pl
from jax.experimental.pallas import tpu as pltpu


# ----------------------------------------------------------------------------
# Fused back-projection + per-plane co-planarity loss kernel.
#   inputs : valid_ref VMEM (P, 1)    f32  (plane had enough pixels)
#            kinv_ref  VMEM (9, P, 1) f32  (per-plane Kinv of its batch, row-major)
#            u_ref     VMEM (3, P, N) f32  (row coord of p1/p2/p3)
#            v_ref     VMEM (3, P, N) f32  (col coord of p1/p2/p3)
#            d_ref     VMEM (3, P, N) f32  (sampled depths of p1/p2/p3)
#   outputs: loss_ref  SMEM (1, 1) f32,  num_ref SMEM (1, 1) f32
# ----------------------------------------------------------------------------
def _make_plane_loss_kernel(delta_cos, delta_diff_x, delta_diff_y):
    def kernel(valid_ref, kinv_ref, u_ref, v_ref, d_ref, loss_ref, num_ref):
        # per-plane Kinv coefficients, each (P, 1), broadcast over N lanes
        k = [kinv_ref[i] for i in range(9)]

        def cam(pt):
            # back-project sampled point `pt` (0/1/2) of every group: (P, N)
            u = u_ref[pt]
            v = v_ref[pt]
            d = d_ref[pt]
            x = d * (k[0] * u + k[1] * v + k[2])
            y = d * (k[3] * u + k[4] * v + k[5])
            z = d * (k[6] * u + k[7] * v + k[8])
            return x, y, z

        x1, y1, z1 = cam(0)
        x2, y2, z2 = cam(1)
        x3, y3, z3 = cam(2)

        # 2-D (x, y) difference vectors between the three points (filter_mask)
        a_x, a_y = x2 - x1, y2 - y1            # xy12
        b_x, b_y = x3 - x1, y3 - y1            # xy13
        c_x, c_y = x3 - x2, y3 - y2            # xy23

        na2 = a_x * a_x + a_y * a_y
        nb2 = b_x * b_x + b_y * b_y
        nc2 = c_x * c_x + c_y * c_y

        def off_cos(dot, n2a, n2b):
            nm = jnp.sqrt(n2a * n2b)
            return dot * pl.reciprocal(nm + 1e-8, approx=True)

        ne_ab = off_cos(a_x * b_x + a_y * b_y, na2, nb2)
        ne_ac = off_cos(a_x * c_x + a_y * c_y, na2, nc2)
        ne_bc = off_cos(b_x * c_x + b_y * c_y, nb2, nc2)

        # torch: sum over full 3x3 |cos|>delta matrix > 3; diagonal terms are
        # always ~1 (>delta) for non-degenerate vectors, degenerate ones are
        # caught by mask_near, so this reduces to "any off-diagonal exceeds".
        mask_cos = ((jnp.abs(ne_ab) > delta_cos)
                    | (jnp.abs(ne_ac) > delta_cos)
                    | (jnp.abs(ne_bc) > delta_cos))

        mask_x = ((jnp.abs(a_x) < delta_diff_x)
                  | (jnp.abs(b_x) < delta_diff_x)
                  | (jnp.abs(c_x) < delta_diff_x))
        mask_y = ((jnp.abs(a_y) < delta_diff_y)
                  | (jnp.abs(b_y) < delta_diff_y)
                  | (jnp.abs(c_y) < delta_diff_y))
        mask_near = mask_x & mask_y

        valid_b = valid_ref[...] > 0.5                         # (P, 1)
        m = (jnp.logical_not(mask_cos | mask_near) & valid_b).astype(jnp.float32)
        num_valid = jnp.sum(m, axis=-1, keepdims=True)         # (P, 1)

        # virtual normal = cross(p12, p13), unit-normalized, camera-facing
        az = z2 - z1
        bz = z3 - z1
        vnx = a_y * bz - az * b_y
        vny = az * b_x - a_x * bz
        vnz = a_x * b_y - a_y * b_x
        vnorm = jnp.sqrt(vnx * vnx + vny * vny + vnz * vnz)
        inv = pl.reciprocal(vnorm + 1e-8, approx=True)
        vnx, vny, vnz = vnx * inv, vny * inv, vnz * inv

        sgn = jnp.where((vnx * x1 + vny * y1 + vnz * z1) > 0, -1.0, 1.0)
        vnx, vny, vnz = vnx * sgn, vny * sgn, vnz * sgn

        # per-plane averaged normal over valid groups (masked sums, axis=-1)
        anx = jnp.sum(vnx * m, axis=-1, keepdims=True)
        any_ = jnp.sum(vny * m, axis=-1, keepdims=True)
        anz = jnp.sum(vnz * m, axis=-1, keepdims=True)
        an_norm = jnp.sqrt(anx * anx + any_ * any_ + anz * anz)
        ainv = pl.reciprocal(an_norm + 1e-5, approx=True)
        anx, any_, anz = anx * ainv, any_ * ainv, anz * ainv

        cos_diff = 1.0 - (vnx * anx + vny * any_ + vnz * anz)   # (P, N)
        loss_p = jnp.sum(cos_diff * m, axis=-1, keepdims=True)  # (P, 1)

        ok = (num_valid >= 2.0).astype(jnp.float32)             # (P, 1)
        loss_ref[0, 0] = jnp.sum(loss_p * ok)
        num_ref[0, 0] = jnp.sum(num_valid * ok)

    return kernel


# ----------------------------------------------------------------------------
# Wrapper reproducing PWNPlanesLoss.forward
# ----------------------------------------------------------------------------
def pwn_planes_loss(prediction, target, mask, intrinsic, *, dataset, sem_mask,
                    plane_ids, sample_groups=128, delta_cos=0.867,
                    delta_diff_x=0.007, delta_diff_y=0.007, loss_weight=1.0,
                    rng_key=None):
    del target, mask  # unused in the loss path (parity with the torch module)
    batch_mask = np.asarray(dataset) == 'Taskonomy'
    if batch_mask.sum() == 0:
        return jnp.sum(prediction) * 0.0

    sel = np.nonzero(batch_mask)[0]
    pred = prediction[sel].astype(jnp.float32)
    intr = intrinsic[sel].astype(jnp.float32)
    ins_mask = sem_mask[sel]

    B, _, H, W = pred.shape
    HW = H * W
    N = int(sample_groups)
    S = 3 * N                       # select_size
    Np = len(plane_ids)
    P = B * Np

    depth_flat = pred[:, 0].reshape(B, HW)          # (B, HW)
    mask_flat = ins_mask[:, 0].reshape(B, HW)       # (B, HW)

    # --- vectorized sampling glue (no per-plane Python loop) -----------------
    # TODO(synk): torch uses torch.unique + torch.nonzero + randperm (dynamic
    # shapes, sampling w/o replacement); here: fixed plane-id enumeration +
    # categorical sampling WITH replacement over in-plane pixels (uniform
    # fallback when a plane id is absent from a batch image).
    plane_ids_arr = jnp.asarray(plane_ids, dtype=jnp.int32)
    m_all = (mask_flat[:, None, :] == plane_ids_arr[None, :, None]).reshape(P, HW)
    cnt = jnp.sum(m_all.astype(jnp.float32), axis=-1)              # (P,)
    valid = (cnt >= 0.6 * S).astype(jnp.float32)[:, None]          # (P, 1)

    if rng_key is None:
        rng_key = jax.random.PRNGKey(0)
    logits = jnp.where(m_all, 0.0, -1e30).astype(jnp.float32)      # (P, HW)
    keys = jax.random.split(rng_key, P)
    idx = jax.vmap(
        lambda k, lg: jax.random.categorical(k, lg, shape=(S,)))(keys, logits)
    idx = idx.astype(jnp.int32)                                     # (P, S)

    bidx = jnp.repeat(jnp.arange(B, dtype=jnp.int32), Np)          # (P,)
    d_smp = depth_flat[bidx[:, None], idx]                          # (P, S)
    u_smp = (idx // W).astype(jnp.float32)                          # row coord
    v_smp = (idx % W).astype(jnp.float32)                           # col coord

    def to3(x):   # (P, 3N) -> (3, P, N): consecutive triples form a group
        return x.reshape(P, N, 3).transpose(2, 0, 1)

    u_pts, v_pts, d_pts = to3(u_smp), to3(v_smp), to3(d_smp)

    kinv = jnp.linalg.inv(intr)                                     # (B, 3, 3)
    kinv_p = kinv[bidx].reshape(P, 9).T[:, :, None]                 # (9, P, 1)

    kernel = _make_plane_loss_kernel(delta_cos, delta_diff_x, delta_diff_y)
    loss_sum, valid_num = pl.pallas_call(
        kernel,
        out_shape=(jax.ShapeDtypeStruct((1, 1), jnp.float32),
                   jax.ShapeDtypeStruct((1, 1), jnp.float32)),
        in_specs=[pl.BlockSpec(memory_space=pltpu.MemorySpace.VMEM)] * 5,
        out_specs=(pl.BlockSpec(memory_space=pltpu.MemorySpace.SMEM),
                   pl.BlockSpec(memory_space=pltpu.MemorySpace.SMEM)),
    )(valid, kinv_p, u_pts, v_pts, d_pts)

    loss = loss_sum[0, 0] / (valid_num[0, 0] + 1e-6) * loss_weight
    loss = jnp.where(jnp.logical_or(jnp.isnan(loss), jnp.isinf(loss)),
                     jnp.sum(pred) * 0.0, loss)
    return loss


if __name__ == "__main__":
    key = jax.random.PRNGKey(0)
    B, C, H, W = 2, 1, 32, 32
    k1, k2 = jax.random.split(key)
    prediction = jax.random.uniform(k1, (B, C, H, W), jnp.float32, 1.0, 5.0)
    target = jax.random.uniform(k2, (B, C, H, W), jnp.float32, 1.0, 5.0)

    # synthetic instance-plane mask: 3 vertical stripes with plane ids 1, 2, 3
    col = jnp.arange(W)
    plane_row = jnp.where(col < 11, 1, jnp.where(col < 22, 2, 3)).astype(jnp.int32)
    sem_mask = jnp.broadcast_to(plane_row[None, None, None, :], (B, 1, H, W))

    fx = fy = 30.0
    cx = cy = 16.0
    K = jnp.array([[fx, 0.0, cx], [0.0, fy, cy], [0.0, 0.0, 1.0]], jnp.float32)
    intrinsic = jnp.broadcast_to(K[None], (B, 3, 3))

    mask = target > 0  # unused, kept for signature parity with the torch module
    dataset = ['Taskonomy', 'Taskonomy']

    loss = pwn_planes_loss(prediction, target, mask, intrinsic,
                           dataset=dataset, sem_mask=sem_mask,
                           plane_ids=(1, 2, 3), sample_groups=128,
                           rng_key=jax.random.PRNGKey(0))
    jax.block_until_ready(loss)
    assert loss.shape == () and jnp.isfinite(loss)
    print("KERNEL_OK")
</pallas_src>

<mosaic_0001>
module attributes {stable_mosaic.version = 11 : i64} {
  func.func @kernel(%arg0: memref<6x1xf32, #tpu.memory_space<vmem>>, %arg1: memref<9x6x1xf32, #tpu.memory_space<vmem>>, %arg2: memref<3x6x128xf32, #tpu.memory_space<vmem>>, %arg3: memref<3x6x128xf32, #tpu.memory_space<vmem>>, %arg4: memref<3x6x128xf32, #tpu.memory_space<vmem>>, %arg5: memref<1x1xf32, #tpu.memory_space<smem>>, %arg6: memref<1x1xf32, #tpu.memory_space<smem>>) attributes {dimension_semantics = [], scalar_prefetch = 0 : i64, scratch_operands = 0 : i64, tpu.core_type = #tpu.core_type<tc>} {
    %c0 = arith.constant 0 : index
    %c0_0 = arith.constant 0 : index
    %c0_1 = arith.constant 0 : index
    %0 = vector.load %arg1[%c0, %c0_0, %c0_1] : memref<9x6x1xf32, #tpu.memory_space<vmem>>, vector<1x6x1xf32>
    %1 = vector.shape_cast %0 : vector<1x6x1xf32> to vector<6x1xf32>
    %c1 = arith.constant 1 : index
    %c0_2 = arith.constant 0 : index
    %c0_3 = arith.constant 0 : index
    %2 = vector.load %arg1[%c1, %c0_2, %c0_3] : memref<9x6x1xf32, #tpu.memory_space<vmem>>, vector<1x6x1xf32>
    %3 = vector.shape_cast %2 : vector<1x6x1xf32> to vector<6x1xf32>
    %c2 = arith.constant 2 : index
    %c0_4 = arith.constant 0 : index
    %c0_5 = arith.constant 0 : index
    %4 = vector.load %arg1[%c2, %c0_4, %c0_5] : memref<9x6x1xf32, #tpu.memory_space<vmem>>, vector<1x6x1xf32>
    %5 = vector.shape_cast %4 : vector<1x6x1xf32> to vector<6x1xf32>
    %c3 = arith.constant 3 : index
    %c0_6 = arith.constant 0 : index
    %c0_7 = arith.constant 0 : index
    %6 = vector.load %arg1[%c3, %c0_6, %c0_7] : memref<9x6x1xf32, #tpu.memory_space<vmem>>, vector<1x6x1xf32>
    %7 = vector.shape_cast %6 : vector<1x6x1xf32> to vector<6x1xf32>
    %c4 = arith.constant 4 : index
    %c0_8 = arith.constant 0 : index
    %c0_9 = arith.constant 0 : index
    %8 = vector.load %arg1[%c4, %c0_8, %c0_9] : memref<9x6x1xf32, #tpu.memory_space<vmem>>, vector<1x6x1xf32>
    %9 = vector.shape_cast %8 : vector<1x6x1xf32> to vector<6x1xf32>
    %c5 = arith.constant 5 : index
    %c0_10 = arith.constant 0 : index
    %c0_11 = arith.constant 0 : index
    %10 = vector.load %arg1[%c5, %c0_10, %c0_11] : memref<9x6x1xf32, #tpu.memory_space<vmem>>, vector<1x6x1xf32>
    %11 = vector.shape_cast %10 : vector<1x6x1xf32> to vector<6x1xf32>
    %c6 = arith.constant 6 : index
    %c0_12 = arith.constant 0 : index
    %c0_13 = arith.constant 0 : index
    %12 = vector.load %arg1[%c6, %c0_12, %c0_13] : memref<9x6x1xf32, #tpu.memory_space<vmem>>, vector<1x6x1xf32>
    %13 = vector.shape_cast %12 : vector<1x6x1xf32> to vector<6x1xf32>
    %c7 = arith.constant 7 : index
    %c0_14 = arith.constant 0 : index
    %c0_15 = arith.constant 0 : index
    %14 = vector.load %arg1[%c7, %c0_14, %c0_15] : memref<9x6x1xf32, #tpu.memory_space<vmem>>, vector<1x6x1xf32>
    %15 = vector.shape_cast %14 : vector<1x6x1xf32> to vector<6x1xf32>
    %c8 = arith.constant 8 : index
    %c0_16 = arith.constant 0 : index
    %c0_17 = arith.constant 0 : index
    %16 = vector.load %arg1[%c8, %c0_16, %c0_17] : memref<9x6x1xf32, #tpu.memory_space<vmem>>, vector<1x6x1xf32>
    %17 = vector.shape_cast %16 : vector<1x6x1xf32> to vector<6x1xf32>
    %c0_18 = arith.constant 0 : index
    %c0_19 = arith.constant 0 : index
    %c0_20 = arith.constant 0 : index
    %18 = vector.load %arg2[%c0_18, %c0_19, %c0_20] : memref<3x6x128xf32, #tpu.memory_space<vmem>>, vector<1x6x128xf32>
    %19 = vector.shape_cast %18 : vector<1x6x128xf32> to vector<6x128xf32>
    %c0_21 = arith.constant 0 : index
    %c0_22 = arith.constant 0 : index
    %c0_23 = arith.constant 0 : index
    %20 = vector.load %arg3[%c0_21, %c0_22, %c0_23] : memref<3x6x128xf32, #tpu.memory_space<vmem>>, vector<1x6x128xf32>
    %21 = vector.shape_cast %20 : vector<1x6x128xf32> to vector<6x128xf32>
    %c0_24 = arith.constant 0 : index
    %c0_25 = arith.constant 0 : index
    %c0_26 = arith.constant 0 : index
    %22 = vector.load %arg4[%c0_24, %c0_25, %c0_26] : memref<3x6x128xf32, #tpu.memory_space<vmem>>, vector<1x6x128xf32>
    %23 = vector.shape_cast %22 : vector<1x6x128xf32> to vector<6x128xf32>
    %24 = vector.broadcast %1 : vector<6x1xf32> to vector<6x128xf32>
    %25 = arith.mulf %24, %19 : vector<6x128xf32>
    %26 = vector.broadcast %3 : vector<6x1xf32> to vector<6x128xf32>
    %27 = arith.mulf %26, %21 : vector<6x128xf32>
    %28 = arith.addf %25, %27 : vector<6x128xf32>
    %29 = vector.broadcast %5 : vector<6x1xf32> to vector<6x128xf32>
    %30 = arith.addf %28, %29 : vector<6x128xf32>
    %31 = arith.mulf %23, %30 : vector<6x128xf32>
    %32 = vector.broadcast %7 : vector<6x1xf32> to vector<6x128xf32>
    %33 = arith.mulf %32, %19 : vector<6x128xf32>
    %34 = vector.broadcast %9 : vector<6x1xf32> to vector<6x128xf32>
    %35 = arith.mulf %34, %21 : vector<6x128xf32>
    %36 = arith.addf %33, %35 : vector<6x128xf32>
    %37 = vector.broadcast %11 : vector<6x1xf32> to vector<6x128xf32>
    %38 = arith.addf %36, %37 : vector<6x128xf32>
    %39 = arith.mulf %23, %38 : vector<6x128xf32>
    %40 = vector.broadcast %13 : vector<6x1xf32> to vector<6x128xf32>
    %41 = arith.mulf %40, %19 : vector<6x128xf32>
    %42 = vector.broadcast %15 : vector<6x1xf32> to vector<6x128xf32>
    %43 = arith.mulf %42, %21 : vector<6x128xf32>
    %44 = arith.addf %41, %43 : vector<6x128xf32>
    %45 = vector.broadcast %17 : vector<6x1xf32> to vector<6x128xf32>
    %46 = arith.addf %44, %45 : vector<6x128xf32>
    %47 = arith.mulf %23, %46 : vector<6x128xf32>
    %c1_27 = arith.constant 1 : index
    %c0_28 = arith.constant 0 : index
    %c0_29 = arith.constant 0 : index
    %48 = vector.load %arg2[%c1_27, %c0_28, %c0_29] : memref<3x6x128xf32, #tpu.memory_space<vmem>>, vector<1x6x128xf32>
    %49 = vector.shape_cast %48 : vector<1x6x128xf32> to vector<6x128xf32>
    %c1_30 = arith.constant 1 : index
    %c0_31 = arith.constant 0 : index
    %c0_32 = arith.constant 0 : index
    %50 = vector.load %arg3[%c1_30, %c0_31, %c0_32] : memref<3x6x128xf32, #tpu.memory_space<vmem>>, vector<1x6x128xf32>
    %51 = vector.shape_cast %50 : vector<1x6x128xf32> to vector<6x128xf32>
    %c1_33 = arith.constant 1 : index
    %c0_34 = arith.constant 0 : index
    %c0_35 = arith.constant 0 : index
    %52 = vector.load %arg4[%c1_33, %c0_34, %c0_35] : memref<3x6x128xf32, #tpu.memory_space<vmem>>, vector<1x6x128xf32>
    %53 = vector.shape_cast %52 : vector<1x6x128xf32> to vector<6x128xf32>
    %54 = vector.broadcast %1 : vector<6x1xf32> to vector<6x128xf32>
    %55 = arith.mulf %54, %49 : vector<6x128xf32>
    %56 = vector.broadcast %3 : vector<6x1xf32> to vector<6x128xf32>
    %57 = arith.mulf %56, %51 : vector<6x128xf32>
    %58 = arith.addf %55, %57 : vector<6x128xf32>
    %59 = vector.broadcast %5 : vector<6x1xf32> to vector<6x128xf32>
    %60 = arith.addf %58, %59 : vector<6x128xf32>
    %61 = arith.mulf %53, %60 : vector<6x128xf32>
    %62 = vector.broadcast %7 : vector<6x1xf32> to vector<6x128xf32>
    %63 = arith.mulf %62, %49 : vector<6x128xf32>
    %64 = vector.broadcast %9 : vector<6x1xf32> to vector<6x128xf32>
    %65 = arith.mulf %64, %51 : vector<6x128xf32>
    %66 = arith.addf %63, %65 : vector<6x128xf32>
    %67 = vector.broadcast %11 : vector<6x1xf32> to vector<6x128xf32>
    %68 = arith.addf %66, %67 : vector<6x128xf32>
    %69 = arith.mulf %53, %68 : vector<6x128xf32>
    %70 = vector.broadcast %13 : vector<6x1xf32> to vector<6x128xf32>
    %71 = arith.mulf %70, %49 : vector<6x128xf32>
    %72 = vector.broadcast %15 : vector<6x1xf32> to vector<6x128xf32>
    %73 = arith.mulf %72, %51 : vector<6x128xf32>
    %74 = arith.addf %71, %73 : vector<6x128xf32>
    %75 = vector.broadcast %17 : vector<6x1xf32> to vector<6x128xf32>
    %76 = arith.addf %74, %75 : vector<6x128xf32>
    %77 = arith.mulf %53, %76 : vector<6x128xf32>
    %c2_36 = arith.constant 2 : index
    %c0_37 = arith.constant 0 : index
    %c0_38 = arith.constant 0 : index
    %78 = vector.load %arg2[%c2_36, %c0_37, %c0_38] : memref<3x6x128xf32, #tpu.memory_space<vmem>>, vector<1x6x128xf32>
    %79 = vector.shape_cast %78 : vector<1x6x128xf32> to vector<6x128xf32>
    %c2_39 = arith.constant 2 : index
    %c0_40 = arith.constant 0 : index
    %c0_41 = arith.constant 0 : index
    %80 = vector.load %arg3[%c2_39, %c0_40, %c0_41] : memref<3x6x128xf32, #tpu.memory_space<vmem>>, vector<1x6x128xf32>
    %81 = vector.shape_cast %80 : vector<1x6x128xf32> to vector<6x128xf32>
    %c2_42 = arith.constant 2 : index
    %c0_43 = arith.constant 0 : index
    %c0_44 = arith.constant 0 : index
    %82 = vector.load %arg4[%c2_42, %c0_43, %c0_44] : memref<3x6x128xf32, #tpu.memory_space<vmem>>, vector<1x6x128xf32>
    %83 = vector.shape_cast %82 : vector<1x6x128xf32> to vector<6x128xf32>
    %84 = vector.broadcast %1 : vector<6x1xf32> to vector<6x128xf32>
    %85 = arith.mulf %84, %79 : vector<6x128xf32>
    %86 = vector.broadcast %3 : vector<6x1xf32> to vector<6x128xf32>
    %87 = arith.mulf %86, %81 : vector<6x128xf32>
    %88 = arith.addf %85, %87 : vector<6x128xf32>
    %89 = vector.broadcast %5 : vector<6x1xf32> to vector<6x128xf32>
    %90 = arith.addf %88, %89 : vector<6x128xf32>
    %91 = arith.mulf %83, %90 : vector<6x128xf32>
    %92 = vector.broadcast %7 : vector<6x1xf32> to vector<6x128xf32>
    %93 = arith.mulf %92, %79 : vector<6x128xf32>
    %94 = vector.broadcast %9 : vector<6x1xf32> to vector<6x128xf32>
    %95 = arith.mulf %94, %81 : vector<6x128xf32>
    %96 = arith.addf %93, %95 : vector<6x128xf32>
    %97 = vector.broadcast %11 : vector<6x1xf32> to vector<6x128xf32>
    %98 = arith.addf %96, %97 : vector<6x128xf32>
    %99 = arith.mulf %83, %98 : vector<6x128xf32>
    %100 = vector.broadcast %13 : vector<6x1xf32> to vector<6x128xf32>
    %101 = arith.mulf %100, %79 : vector<6x128xf32>
    %102 = vector.broadcast %15 : vector<6x1xf32> to vector<6x128xf32>
    %103 = arith.mulf %102, %81 : vector<6x128xf32>
    %104 = arith.addf %101, %103 : vector<6x128xf32>
    %105 = vector.broadcast %17 : vector<6x1xf32> to vector<6x128xf32>
    %106 = arith.addf %104, %105 : vector<6x128xf32>
    %107 = arith.mulf %83, %106 : vector<6x128xf32>
    %108 = arith.subf %61, %31 : vector<6x128xf32>
    %109 = arith.subf %69, %39 : vector<6x128xf32>
    %110 = arith.subf %91, %31 : vector<6x128xf32>
    %111 = arith.subf %99, %39 : vector<6x128xf32>
    %112 = arith.subf %91, %61 : vector<6x128xf32>
    %113 = arith.subf %99, %69 : vector<6x128xf32>
    %114 = arith.mulf %108, %108 : vector<6x128xf32>
    %115 = arith.mulf %109, %109 : vector<6x128xf32>
    %116 = arith.addf %114, %115 : vector<6x128xf32>
    %117 = arith.mulf %110, %110 : vector<6x128xf32>
    %118 = arith.mulf %111, %111 : vector<6x128xf32>
    %119 = arith.addf %117, %118 : vector<6x128xf32>
    %120 = arith.mulf %112, %112 : vector<6x128xf32>
    %121 = arith.mulf %113, %113 : vector<6x128xf32>
    %122 = arith.addf %120, %121 : vector<6x128xf32>
    %123 = arith.mulf %108, %110 : vector<6x128xf32>
    %124 = arith.mulf %109, %111 : vector<6x128xf32>
    %125 = arith.addf %123, %124 : vector<6x128xf32>
    %126 = arith.mulf %116, %119 : vector<6x128xf32>
    %127 = math.sqrt %126 : vector<6x128xf32>
    %cst = arith.constant 9.99999993E-9 : f32
    %128 = vector.broadcast %cst : f32 to vector<6x128xf32>
    %129 = arith.addf %127, %128 : vector<6x128xf32>
    %130 = tpu.reciprocal %129 {approx = true} : vector<6x128xf32> -> vector<6x128xf32>
    %131 = arith.mulf %125, %130 : vector<6x128xf32>
    %132 = arith.mulf %108, %112 : vector<6x128xf32>
    %133 = arith.mulf %109, %113 : vector<6x128xf32>
    %134 = arith.addf %132, %133 : vector<6x128xf32>
    %135 = arith.mulf %116, %122 : vector<6x128xf32>
    %136 = math.sqrt %135 : vector<6x128xf32>
    %cst_45 = arith.constant 9.99999993E-9 : f32
    %137 = vector.broadcast %cst_45 : f32 to vector<6x128xf32>
    %138 = arith.addf %136, %137 : vector<6x128xf32>
    %139 = tpu.reciprocal %138 {approx = true} : vector<6x128xf32> -> vector<6x128xf32>
    %140 = arith.mulf %134, %139 : vector<6x128xf32>
    %141 = arith.mulf %110, %112 : vector<6x128xf32>
    %142 = arith.mulf %111, %113 : vector<6x128xf32>
    %143 = arith.addf %141, %142 : vector<6x128xf32>
    %144 = arith.mulf %119, %122 : vector<6x128xf32>
    %145 = math.sqrt %144 : vector<6x128xf32>
    %cst_46 = arith.constant 9.99999993E-9 : f32
    %146 = vector.broadcast %cst_46 : f32 to vector<6x128xf32>
    %147 = arith.addf %145, %146 : vector<6x128xf32>
    %148 = tpu.reciprocal %147 {approx = true} : vector<6x128xf32> -> vector<6x128xf32>
    %149 = arith.mulf %143, %148 : vector<6x128xf32>
    %150 = math.absf %131 : vector<6x128xf32>
    %cst_47 = arith.constant 0.866999983 : f32
    %151 = vector.broadcast %cst_47 : f32 to vector<6x128xf32>
    %152 = arith.cmpf ogt, %150, %151 : vector<6x128xf32>
    %153 = math.absf %140 : vector<6x128xf32>
    %cst_48 = arith.constant 0.866999983 : f32
    %154 = vector.broadcast %cst_48 : f32 to vector<6x128xf32>
    %155 = arith.cmpf ogt, %153, %154 : vector<6x128xf32>
    %156 = arith.ori %152, %155 : vector<6x128xi1>
    %157 = math.absf %149 : vector<6x128xf32>
    %cst_49 = arith.constant 0.866999983 : f32
    %158 = vector.broadcast %cst_49 : f32 to vector<6x128xf32>
    %159 = arith.cmpf ogt, %157, %158 : vector<6x128xf32>
    %160 = arith.ori %156, %159 : vector<6x128xi1>
    %161 = math.absf %108 : vector<6x128xf32>
    %cst_50 = arith.constant 7.000000e-03 : f32
    %162 = vector.broadcast %cst_50 : f32 to vector<6x128xf32>
    %163 = arith.cmpf olt, %161, %162 : vector<6x128xf32>
    %164 = math.absf %110 : vector<6x128xf32>
    %cst_51 = arith.constant 7.000000e-03 : f32
    %165 = vector.broadcast %cst_51 : f32 to vector<6x128xf32>
    %166 = arith.cmpf olt, %164, %165 : vector<6x128xf32>
    %167 = arith.ori %163, %166 : vector<6x128xi1>
    %168 = math.absf %112 : vector<6x128xf32>
    %cst_52 = arith.constant 7.000000e-03 : f32
    %169 = vector.broadcast %cst_52 : f32 to vector<6x128xf32>
    %170 = arith.cmpf olt, %168, %169 : vector<6x128xf32>
    %171 = arith.ori %167, %170 : vector<6x128xi1>
    %172 = math.absf %109 : vector<6x128xf32>
    %cst_53 = arith.constant 7.000000e-03 : f32
    %173 = vector.broadcast %cst_53 : f32 to vector<6x128xf32>
    %174 = arith.cmpf olt, %172, %173 : vector<6x128xf32>
    %175 = math.absf %111 : vector<6x128xf32>
    %cst_54 = arith.constant 7.000000e-03 : f32
    %176 = vector.broadcast %cst_54 : f32 to vector<6x128xf32>
    %177 = arith.cmpf olt, %175, %176 : vector<6x128xf32>
    %178 = arith.ori %174, %177 : vector<6x128xi1>
    %179 = math.absf %113 : vector<6x128xf32>
    %cst_55 = arith.constant 7.000000e-03 : f32
    %180 = vector.broadcast %cst_55 : f32 to vector<6x128xf32>
    %181 = arith.cmpf olt, %179, %180 : vector<6x128xf32>
    %182 = arith.ori %178, %181 : vector<6x128xi1>
    %183 = arith.andi %171, %182 : vector<6x128xi1>
    %c0_56 = arith.constant 0 : index
    %c0_57 = arith.constant 0 : index
    %184 = vector.load %arg0[%c0_56, %c0_57] : memref<6x1xf32, #tpu.memory_space<vmem>>, vector<6x1xf32>
    %cst_58 = arith.constant 5.000000e-01 : f32
    %185 = vector.broadcast %cst_58 : f32 to vector<6x1xf32>
    %186 = arith.cmpf ogt, %184, %185 : vector<6x1xf32>
    %187 = arith.ori %160, %183 : vector<6x128xi1>
    %cst_59 = arith.constant dense<true> : vector<6x128xi1>
    %188 = arith.xori %187, %cst_59 : vector<6x128xi1>
    %189 = vector.broadcast %186 : vector<6x1xi1> to vector<6x128xi1>
    %190 = arith.andi %188, %189 : vector<6x128xi1>
    %191 = arith.extui %190 : vector<6x128xi1> to vector<6x128xi32>
    %192 = arith.sitofp %191 : vector<6x128xi32> to vector<6x128xf32>
    %cst_60 = arith.constant dense<0.000000e+00> : vector<6xf32>
    %193 = vector.multi_reduction <add>, %192, %cst_60 [1] : vector<6x128xf32> to vector<6xf32>
    %194 = vector.shape_cast %193 : vector<6xf32> to vector<6x1xf32>
    %195 = arith.subf %77, %47 : vector<6x128xf32>
    %196 = arith.subf %107, %47 : vector<6x128xf32>
    %197 = arith.mulf %109, %196 : vector<6x128xf32>
    %198 = arith.mulf %195, %111 : vector<6x128xf32>
    %199 = arith.subf %197, %198 : vector<6x128xf32>
    %200 = arith.mulf %195, %110 : vector<6x128xf32>
    %201 = arith.mulf %108, %196 : vector<6x128xf32>
    %202 = arith.subf %200, %201 : vector<6x128xf32>
    %203 = arith.mulf %108, %111 : vector<6x128xf32>
    %204 = arith.mulf %109, %110 : vector<6x128xf32>
    %205 = arith.subf %203, %204 : vector<6x128xf32>
    %206 = arith.mulf %199, %199 : vector<6x128xf32>
    %207 = arith.mulf %202, %202 : vector<6x128xf32>
    %208 = arith.addf %206, %207 : vector<6x128xf32>
    %209 = arith.mulf %205, %205 : vector<6x128xf32>
    %210 = arith.addf %208, %209 : vector<6x128xf32>
    %211 = math.sqrt %210 : vector<6x128xf32>
    %cst_61 = arith.constant 9.99999993E-9 : f32
    %212 = vector.broadcast %cst_61 : f32 to vector<6x128xf32>
    %213 = arith.addf %211, %212 : vector<6x128xf32>
    %214 = tpu.reciprocal %213 {approx = true} : vector<6x128xf32> -> vector<6x128xf32>
    %215 = arith.mulf %199, %214 : vector<6x128xf32>
    %216 = arith.mulf %202, %214 : vector<6x128xf32>
    %217 = arith.mulf %205, %214 : vector<6x128xf32>
    %218 = arith.mulf %215, %31 : vector<6x128xf32>
    %219 = arith.mulf %216, %39 : vector<6x128xf32>
    %220 = arith.addf %218, %219 : vector<6x128xf32>
    %221 = arith.mulf %217, %47 : vector<6x128xf32>
    %222 = arith.addf %220, %221 : vector<6x128xf32>
    %cst_62 = arith.constant 0.000000e+00 : f32
    %223 = vector.broadcast %cst_62 : f32 to vector<6x128xf32>
    %224 = arith.cmpf ogt, %222, %223 : vector<6x128xf32>
    %cst_63 = arith.constant -1.000000e+00 : f32
    %cst_64 = arith.constant 1.000000e+00 : f32
    %225 = vector.broadcast %cst_63 : f32 to vector<6x128xf32>
    %226 = vector.broadcast %cst_64 : f32 to vector<6x128xf32>
    %227 = arith.select %224, %225, %226 : vector<6x128xi1>, vector<6x128xf32>
    %228 = arith.mulf %215, %227 : vector<6x128xf32>
    %229 = arith.mulf %216, %227 : vector<6x128xf32>
    %230 = arith.mulf %217, %227 : vector<6x128xf32>
    %231 = arith.mulf %228, %192 : vector<6x128xf32>
    %cst_65 = arith.constant dense<0.000000e+00> : vector<6xf32>
    %232 = vector.multi_reduction <add>, %231, %cst_65 [1] : vector<6x128xf32> to vector<6xf32>
    %233 = vector.shape_cast %232 : vector<6xf32> to vector<6x1xf32>
    %234 = arith.mulf %229, %192 : vector<6x128xf32>
    %cst_66 = arith.constant dense<0.000000e+00> : vector<6xf32>
    %235 = vector.multi_reduction <add>, %234, %cst_66 [1] : vector<6x128xf32> to vector<6xf32>
    %236 = vector.shape_cast %235 : vector<6xf32> to vector<6x1xf32>
    %237 = arith.mulf %230, %192 : vector<6x128xf32>
    %cst_67 = arith.constant dense<0.000000e+00> : vector<6xf32>
    %238 = vector.multi_reduction <add>, %237, %cst_67 [1] : vector<6x128xf32> to vector<6xf32>
    %239 = vector.shape_cast %238 : vector<6xf32> to vector<6x1xf32>
    %240 = arith.mulf %233, %233 : vector<6x1xf32>
    %241 = arith.mulf %236, %236 : vector<6x1xf32>
    %242 = arith.addf %240, %241 : vector<6x1xf32>
    %243 = arith.mulf %239, %239 : vector<6x1xf32>
    %244 = arith.addf %242, %243 : vector<6x1xf32>
    %245 = math.sqrt %244 : vector<6x1xf32>
    %cst_68 = arith.constant 9.99999974E-6 : f32
    %246 = vector.broadcast %cst_68 : f32 to vector<6x1xf32>
    %247 = arith.addf %245, %246 : vector<6x1xf32>
    %248 = tpu.reciprocal %247 {approx = true} : vector<6x1xf32> -> vector<6x1xf32>
    %249 = arith.mulf %233, %248 : vector<6x1xf32>
    %250 = arith.mulf %236, %248 : vector<6x1xf32>
    %251 = arith.mulf %239, %248 : vector<6x1xf32>
    %252 = vector.broadcast %249 : vector<6x1xf32> to vector<6x128xf32>
    %253 = arith.mulf %228, %252 : vector<6x128xf32>
    %254 = vector.broadcast %250 : vector<6x1xf32> to vector<6x128xf32>
    %255 = arith.mulf %229, %254 : vector<6x128xf32>
    %256 = arith.addf %253, %255 : vector<6x128xf32>
    %257 = vector.broadcast %251 : vector<6x1xf32> to vector<6x128xf32>
    %258 = arith.mulf %230, %257 : vector<6x128xf32>
    %259 = arith.addf %256, %258 : vector<6x128xf32>
    %cst_69 = arith.constant 1.000000e+00 : f32
    %260 = vector.broadcast %cst_69 : f32 to vector<6x128xf32>
    %261 = arith.subf %260, %259 : vector<6x128xf32>
    %262 = arith.mulf %261, %192 : vector<6x128xf32>
    %cst_70 = arith.constant dense<0.000000e+00> : vector<6xf32>
    %263 = vector.multi_reduction <add>, %262, %cst_70 [1] : vector<6x128xf32> to vector<6xf32>
    %264 = vector.shape_cast %263 : vector<6xf32> to vector<6x1xf32>
    %cst_71 = arith.constant 2.000000e+00 : f32
    %265 = vector.broadcast %cst_71 : f32 to vector<6x1xf32>
    %266 = arith.cmpf oge, %194, %265 : vector<6x1xf32>
    %267 = arith.extui %266 : vector<6x1xi1> to vector<6x1xi32>
    %268 = arith.sitofp %267 : vector<6x1xi32> to vector<6x1xf32>
    %269 = arith.mulf %264, %268 : vector<6x1xf32>
    %270 = vector.shape_cast %269 : vector<6x1xf32> to vector<1x6x1xf32>
    %cst_72 = arith.constant dense<0.000000e+00> : vector<1xf32>
    %271 = vector.multi_reduction <add>, %270, %cst_72 [1, 2] : vector<1x6x1xf32> to vector<1xf32>
    %272 = vector.shape_cast %271 : vector<1xf32> to vector<1x1x1xf32>
    %273 = vector.extract %272[0, 0, 0] : f32 from vector<1x1x1xf32>
    %c0_73 = arith.constant 0 : index
    %c0_74 = arith.constant 0 : index
    %274 = memref.load %arg5[%c0_73, %c0_74] : memref<1x1xf32, #tpu.memory_space<smem>>
    memref.store %273, %arg5[%c0_73, %c0_74] : memref<1x1xf32, #tpu.memory_space<smem>>
    %275 = arith.mulf %194, %268 : vector<6x1xf32>
    %276 = vector.shape_cast %275 : vector<6x1xf32> to vector<1x6x1xf32>
    %cst_75 = arith.constant dense<0.000000e+00> : vector<1xf32>
    %277 = vector.multi_reduction <add>, %276, %cst_75 [1, 2] : vector<1x6x1xf32> to vector<1xf32>
    %278 = vector.shape_cast %277 : vector<1xf32> to vector<1x1x1xf32>
    %279 = vector.extract %278[0, 0, 0] : f32 from vector<1x1x1xf32>
    %c0_76 = arith.constant 0 : index
    %c0_77 = arith.constant 0 : index
    %280 = memref.load %arg6[%c0_76, %c0_77] : memref<1x1xf32, #tpu.memory_space<smem>>
    memref.store %279, %arg6[%c0_76, %c0_77] : memref<1x1xf32, #tpu.memory_space<smem>>
    return
  }
}

</mosaic_0001>

<bundles_post_ra>
// kernel: tpu_custom_call.1
= control target key start
LH: loop header
LB: loop body
LE: loop exit
PB: predicated region body
PF: predicated region fallthrough
CT: control target
= control target key end

     0   :  { %12 = vsyncpa [#allocation3], 0  ;;  %v448_v2 = vmov 0   ;;  %s664_s0 = inlined_call_operand.vmem [shape: f32[6,1], index: 0, kind: input, shape index: {}]   ;;  %s665_s1 = inlined_call_operand.vmem [shape: f32[9,6,1], index: 1, kind: input, shape index: {}]   ;;  %s666_s2 = inlined_call_operand.vmem [shape: f32[3,6,128], index: 2, kind: input, shape index: {}]   ;;  %s667_s3 = inlined_call_operand.vmem [shape: f32[3,6,128], index: 3, kind: input, shape index: {}]   ;;  %s668_s4 = inlined_call_operand.vmem [shape: f32[3,6,128], index: 4, kind: input, shape index: {}]   ;;  %s669_s5 = inlined_call_operand.hbm [shape: f32[1,1], index: 5, kind: output, shape index: {0}]   ;;  %s670_s6 = inlined_call_operand.hbm [shape: f32[1,1], index: 6, kind: output, shape index: {1}]  }
   0x1   :  { %v378_v0 = vld [vmem:[%s665_s1 + $0x18] sm:$0x3f]  ;;  %v24_v1 = vld [vmem:[%s665_s1] sm:$0x3f]  ;;  %403 = vset.pattern.permute.xlu1 %v448_v2  ;;  %402 = vset.pattern.permute.xlu0 %v448_v2  ;;  %v376_v4 = vld [vmem:[%s665_s1 + $0x8] sm:$0x3f] }
   0x2   :  { %66 = vperm.xlu1 %403, %v378_v0   ;;  %46 = vperm.xlu0 %402, %v24_v1   ;;  %v379_v3 = vld [vmem:[%s665_s1 + $0x20] sm:$0x3f] }
   0x6   :  { %72 = vperm.xlu1 %403, %v379_v3   ;;  %52 = vperm.xlu0 %402, %v376_v4  }
   0x7   :  { %13 = vsyncpa [#allocation5], 0  ;;  %v382_v5 = vld [vmem:[%s665_s1 + $0x38] sm:$0x3f]  ;;  %v381_v6 = vld [vmem:[%s665_s1 + $0x30] sm:$0x3f] }
   0x8   :  { %v228_v7 = vld [vmem:[%s664_s0] sm:$0x3f]  ;;  %v380_v8 = vld [vmem:[%s665_s1 + $0x28] sm:$0x3f]  ;;  %v377_v9 = vld [vmem:[%s665_s1 + $0x10] sm:$0x3f] }
   0x9   :  { %vm229_vm0 = vcmp.gt.f32.partialorder %v228_v7, 0.5  ;;  %v383_v11 = vld [vmem:[%s665_s1 + $0x40] sm:$0x3f]  ;;  %v385_v15 = vld [vmem:[%s667_s3 + $0x8] sm:$0x3f]  ;;  %s424_s10 = scalar_lea.hbm %s669_s5, 16 }
   0xa   :  { %92 = vperm.xlu1 %403, %v382_v5   ;;  %86 = vperm.xlu0 %402, %v381_v6   ;;  %v232_v10 = vsel %vm229_vm0, 1, %v448_v2  ;;  %v42_v14 = vld [vmem:[%s667_s3] sm:$0x3f]  ;;  %v388_v16 = vld [vmem:[%s667_s3 + $0x10] sm:$0x3f]  ;;  %p425_p0 = scmp.ne.s32.totalorder %s669_s5, %s424_s10  ;;  %p428_p1 = scmp.lt.u32.totalorder %s424_s10, %s669_s5 }
   0xb   :  { %v41_v19 = vld [vmem:[%s666_s2] sm:$0x3f]  ;;  %v384_v20 = vld [vmem:[%s666_s2 + $0x8] sm:$0x3f]  ;;  %v387_v21 = vld [vmem:[%s666_s2 + $0x10] sm:$0x3f] }
   0xc   :  { %v43_v40 = vld [vmem:[%s668_s4] sm:$0x3f]  ;;  %v386_v41 = vld [vmem:[%s668_s4 + $0x8] sm:$0x3f]  ;;  %v389_v42 = vld [vmem:[%s668_s4 + $0x10] sm:$0x3f]  ;;  %p430_p2 = pnand %p428_p1, %p425_p0 }
   0xe   :  { %79 = vperm.xlu1 %403, %v380_v8   ;;  %59 = vperm.xlu0 %402, %v377_v9  }
  0x12   :  { %234 = vperm.xlu1 %403, %v232_v10   ;;  %99 = vperm.xlu0 %402, %v383_v11  }
  0x81   :  { %v67_v12 = vpop.permute.xlu1 %66  ;;  %v47_v13 = vpop.permute.xlu0 %46 }
  0x82   :  { %v69_v22 = vmul.f32 %v67_v12, %v41_v19  ;;  %v115_v23 = vmul.f32 %v384_v20, %v67_v12  ;;  %v136_v24 = vmul.f32 %v387_v21, %v67_v12  ;;  %v49_v33 = vmul.f32 %v47_v13, %v41_v19 }
  0x83   :  { %v110_v34 = vmul.f32 %v384_v20, %v47_v13  ;;  %v131_v35 = vmul.f32 %v387_v21, %v47_v13 }
  0x85   :  { %v73_v17 = vpop.permute.xlu1 %72  ;;  %v53_v18 = vpop.permute.xlu0 %52 }
  0x86   :  { %v75_v25 = vmul.f32 %v73_v17, %v42_v14  ;;  %v116_v26 = vmul.f32 %v385_v15, %v73_v17  ;;  %v137_v27 = vmul.f32 %v388_v16, %v73_v17  ;;  %v55_v28 = vmul.f32 %v53_v18, %v42_v14 }
  0x87   :  { %v111_v29 = vmul.f32 %v385_v15, %v53_v18  ;;  %v132_v30 = vmul.f32 %v388_v16, %v53_v18 }
  0x88   :  { %v76_v36 = vadd.f32 %v75_v25, %v69_v22  ;;  %v117_v37 = vadd.f32 %v116_v26, %v115_v23  ;;  %v138_v38 = vadd.f32 %v137_v27, %v136_v24  ;;  %v56_v39 = vadd.f32 %v55_v28, %v49_v33 }
  0x89   :  { %v93_v31 = vpop.permute.xlu1 %92  ;;  %v87_v32 = vpop.permute.xlu0 %86  ;;  %v112_v44 = vadd.f32 %v111_v29, %v110_v34  ;;  %v133_v45 = vadd.f32 %v132_v30, %v131_v35 }
  0x8a   :  { %v95_v1 = vmul.f32 %v93_v31, %v42_v14  ;;  %v89_v5 = vmul.f32 %v87_v32, %v41_v19  ;;  %v121_v12 = vmul.f32 %v385_v15, %v93_v31  ;;  %v142_v13 = vmul.f32 %v388_v16, %v93_v31 }
  0x8b   :  { %v120_v14 = vmul.f32 %v384_v20, %v87_v32  ;;  %v141_v17 = vmul.f32 %v387_v21, %v87_v32 }
  0x8c   :  { %v96_v24 = vadd.f32 %v95_v1, %v89_v5 }
  0x8d   :  { %v80_v43 = vpop.permute.xlu1 %79  ;;  %v60_v46 = vpop.permute.xlu0 %59  ;;  %v122_v26 = vadd.f32 %v121_v12, %v120_v14  ;;  %v143_v27 = vadd.f32 %v142_v13, %v141_v17 }
  0x8e   :  { %v82_v47 = vadd.f32 %v80_v43, %v76_v36  ;;  %v118_v48 = vadd.f32 %v117_v37, %v80_v43  ;;  %v139_v49 = vadd.f32 %v138_v38, %v80_v43  ;;  %v62_v50 = vadd.f32 %v60_v46, %v56_v39 }
  0x8f   :  { %v113_v51 = vadd.f32 %v112_v44, %v60_v46  ;;  %v134_v52 = vadd.f32 %v133_v45, %v60_v46 }
  0x90   :  { %v546_v53 = vmul.f32 %v82_v47, %v43_v40  ;;  %v119_v54 = vmul.f32 %v386_v41, %v118_v48  ;;  %v140_v55 = vmul.f32 %v389_v42, %v139_v49  ;;  %v548_v56 = vmul.f32 %v62_v50, %v43_v40 }
  0x91   :  { %v114_v57 = vmul.f32 %v386_v41, %v113_v51  ;;  %v135_v58 = vmul.f32 %v389_v42, %v134_v52  ;;  %v100_v18 = vpop.permute.xlu0 %99 }
  0x92   :  { %v551_v59 = vsub.f32 %v119_v54, %v546_v53  ;;  %v554_v60 = vsub.f32 %v140_v55, %v546_v53  ;;  %v556_v61 = vsub.f32 %v140_v55, %v119_v54  ;;  %v102_v25 = vadd.f32 %v100_v18, %v96_v24 }
  0x93   :  { %v559_v62 = vsub.f32 %v114_v57, %v548_v56  ;;  %v562_v63 = vsub.f32 %v135_v58, %v548_v56  ;;  %v564_v0 = vsub.f32 %v135_v58, %v114_v57  ;;  %v123_v29 = vadd.f32 %v122_v26, %v100_v18 }
  0x94   :  { %v159_v2 = vmul.f32 %v556_v61, %v556_v61  ;;  %v153_v3 = vmul.f32 %v551_v59, %v551_v59  ;;  %v156_v4 = vmul.f32 %v554_v60, %v554_v60  ;;  %v578_v28 = vmul.f32 %v102_v25, %v43_v40 }
  0x95   :  { %v152_v6 = vmul.f32 %v559_v62, %v559_v62  ;;  %v155_v7 = vmul.f32 %v562_v63, %v562_v63  ;;  %v158_v8 = vmul.f32 %v564_v0, %v564_v0  ;;  %v144_v30 = vadd.f32 %v143_v27, %v100_v18 }
  0x96   :  { %v124_v33 = vmul.f32 %v386_v41, %v123_v29  ;;  %v252_v21 = vmul.f32 %v554_v60, %v559_v62  ;;  %v253_v31 = vmul.f32 %v562_v63, %v551_v59  ;;  %v190_v14 = vmul.f32 %v556_v61, %v554_v60 }
  0x97   :  { %v154_v9 = vadd.f32 %v153_v3, %v152_v6  ;;  %v157_v10 = vadd.f32 %v156_v4, %v155_v7  ;;  %v160_v11 = vadd.f32 %v159_v2, %v158_v8  ;;  %v145_v15 = vmul.f32 %v389_v42, %v144_v30 }
  0x98   :  { %v244_v16 = vsub.f32 %v124_v33, %v578_v28  ;;  %v594_v46 = vsub.f32 %v252_v21, %v253_v31  ;;  %v162_v7 = vmul.f32 %v554_v60, %v551_v59  ;;  %v176_v8 = vmul.f32 %v556_v61, %v551_v59 }
  0x99   :  { %v164_v22 = vmul.f32 %v157_v10, %v154_v9  ;;  %v178_v23 = vmul.f32 %v160_v11, %v154_v9  ;;  %v192_v19 = vmul.f32 %v160_v11, %v157_v10  ;;  %v245_v20 = vsub.f32 %v145_v15, %v578_v28 }
  0x9a   :  { %v247_v36 = vmul.f32 %v244_v16, %v554_v60  ;;  %v249_v37 = vmul.f32 %v244_v16, %v562_v63  ;;  %v258_v4 = vmul.f32 %v594_v46, %v594_v46  ;;  %v161_v9 = vmul.f32 %v562_v63, %v559_v62 }
  0x9b   :  { %404 = vrsqrt.f32 %v164_v22  ;;  %vm167_vm1 = vcmp.eq.f32.partialorder %v164_v22, inf  ;;  %vm169_vm2 = vcmp.eq.f32.partialorder %v164_v22, 0.0  ;;  %v170_v32 = vand.u32 2147483648, %v164_v22 }
  0x9c   :  { %406 = vrsqrt.f32 %v178_v23  ;;  %v246_v35 = vmul.f32 %v245_v20, %v551_v59  ;;  %v250_v38 = vmul.f32 %v245_v20, %v559_v62  ;;  %vm181_vm3 = vcmp.eq.f32.partialorder %v178_v23, inf }
  0x9d   :  { %408 = vrsqrt.f32 %v192_v19  ;;  %vm183_vm4 = vcmp.eq.f32.partialorder %v178_v23, 0.0  ;;  %v184_v41 = vand.u32 2147483648, %v178_v23  ;;  %vm195_vm5 = vcmp.eq.f32.partialorder %v192_v19, inf }
  0x9e   :  { %v590_v44 = vsub.f32 %v246_v35, %v247_v36  ;;  %v592_v45 = vsub.f32 %v249_v37, %v250_v38  ;;  %v198_v49 = vand.u32 2147483648, %v192_v19  ;;  %vm197_vm6 = vcmp.eq.f32.partialorder %v192_v19, 0.0 }
  0x9f   :  { %v175_v10 = vmul.f32 %v564_v0, %v559_v62  ;;  %v189_v17 = vmul.f32 %v564_v0, %v562_v63  ;;  %v163_v18 = vadd.f32 %v162_v7, %v161_v9  ;;  %v219_v33 = vand.u32 2147483647, %v551_v59 }
  0xa0   :  { %v255_v52 = vmul.f32 %v590_v44, %v590_v44  ;;  %v256_v54 = vmul.f32 %v592_v45, %v592_v45  ;;  %v221_v15 = vand.u32 2147483647, %v554_v60  ;;  %v211_v21 = vand.u32 2147483647, %v559_v62 }
  0xa1   :  { %v191_v29 = vadd.f32 %v190_v14, %v189_v17  ;;  %v213_v31 = vand.u32 2147483647, %v562_v63  ;;  %v224_v35 = vand.u32 2147483647, %v556_v61  ;;  %vm622_vm9 = vcmp.lt.f32.partialorder %v219_v33, 0.007 }
  0xa2   :  { %v257_v3 = vadd.f32 %v256_v54, %v255_v52  ;;  %vm222_vm10 = vcmp.lt.f32.partialorder %v221_v15, 0.007  ;;  %v216_v59 = vand.u32 2147483647, %v564_v0  ;;  %vm212_vm11 = vcmp.lt.f32.partialorder %v211_v21, 0.007 }
  0xa3   :  { %vm214_vm12 = vcmp.lt.f32.partialorder %v213_v31, 0.007  ;;  %vm223_vm15 = vmor %vm622_vm9, %vm222_vm10  ;;  %vm225_vm0 = vcmp.lt.f32.partialorder %v224_v35, 0.007  ;;  %vm449_vm10 = vmmov 1  }
  0xa4   :  { %v259_v5 = vadd.f32 %v258_v4, %v257_v3 }
  0xa5   :  { %v405_v34 = vpop.eup %404 }
  0xa6   :  { %v407_v39 = vpop.eup %406  ;;  %v166_v40 = vmul.f32 %v405_v34, %v164_v22  ;;  %vm262_vm7 = vcmp.eq.f32.partialorder %v259_v5, inf  ;;  %vm264_vm8 = vcmp.eq.f32.partialorder %v259_v5, 0.0 }
  0xa7   :  { %v409_v42 = vpop.eup %408  ;;  %v180_v43 = vmul.f32 %v407_v39, %v178_v23  ;;  %v235_v39 = vpop.permute.xlu1 %234 }
  0xa8   :  { %v168_v47 = vsel %vm167_vm1, %v164_v22, %v166_v40  ;;  %v194_v48 = vmul.f32 %v409_v42, %v192_v19  ;;  %v177_v22 = vadd.f32 %v176_v8, %v175_v10  ;;  %vm215_vm1 = vmor %vm212_vm11, %vm214_vm12  ;;  %vm236_vm12 = vcmp.eq.s32.totalorder %v235_v39, 1 }
  0xa9   :  { %v171_v50 = vsel %vm169_vm2, %v170_v32, %v168_v47  ;;  %v182_v51 = vsel %vm181_vm3, %v178_v23, %v180_v43  ;;  %vm217_vm2 = vcmp.lt.f32.partialorder %v216_v59, 0.007  ;;  %v450_v43 = vmov 1.0  }
  0xaa   :  { %v172_v55 = vadd.f32 1e-08, %v171_v50  ;;  %v185_v57 = vsel %vm183_vm4, %v184_v41, %v182_v51  ;;  %v196_v58 = vsel %vm195_vm5, %v192_v19, %v194_v48  ;;  %v265_v19 = vand.u32 2147483648, %v259_v5  ;;  %vm226_vm5 = vmor %vm223_vm15, %vm225_vm0 }
  0xab   :  { %v186_v1 = vadd.f32 1e-08, %v185_v57  ;;  %v199_v2 = vsel %vm197_vm6, %v198_v49, %v196_v58  ;;  %vm218_vm6 = vmor %vm215_vm1, %vm217_vm2  ;;  %v451_v48 = vmov 0.0   ;;  %vm240_vm15 = vcmask 1045504  }
  0xac   :  { %410 = vrcp.f32 %v172_v55  ;;  %v200_v6 = vadd.f32 1e-08, %v199_v2 }
  0xad   :  { %412 = vrcp.f32 %v186_v1 }
  0xae   :  { %414 = vrsqrt.f32 %v259_v5 }
  0xaf   :  { %416 = vrcp.f32 %v200_v6 }
  0xb6   :  { %v411_v11 = vpop.eup %410 }
  0xb7   :  { %v413_v12 = vpop.eup %412  ;;  %v174_v25 = vmul.f32 %v411_v11, %v163_v18 }
  0xb8   :  { %v415_v13 = vpop.eup %414  ;;  %v188_v26 = vmul.f32 %v413_v12, %v177_v22 }
  0xb9   :  { %v261_v23 = vmul.f32 %v415_v13, %v259_v5  ;;  %v417_v24 = vpop.eup %416  ;;  %v203_v32 = vand.u32 2147483647, %v174_v25 }
  0xba   :  { %v202_v20 = vmul.f32 %v417_v24, %v191_v29  ;;  %v205_v34 = vand.u32 2147483647, %v188_v26 }
  0xbb   :  { %v263_v27 = vsel %vm262_vm7, %v259_v5, %v261_v23  ;;  %vm204_vm13 = vcmp.gt.f32.partialorder %v203_v32, 0.867 }
  0xbc   :  { %v266_v30 = vsel %vm264_vm8, %v265_v19, %v263_v27  ;;  %v208_v37 = vand.u32 2147483647, %v202_v20  ;;  %vm206_vm14 = vcmp.gt.f32.partialorder %v205_v34, 0.867  ;;  %vm227_vm8 = vmand %vm218_vm6, %vm226_vm5 }
  0xbd   :  { %v267_v16 = vadd.f32 1e-08, %v266_v30  ;;  %vm207_vm3 = vmor %vm204_vm13, %vm206_vm14 }
  0xbe   :  { %vm209_vm4 = vcmp.gt.f32.partialorder %v208_v37, 0.867 }
  0xbf   :  { %418 = vrcp.f32 %v267_v16  ;;  %vm210_vm7 = vmor %vm207_vm3, %vm209_vm4  ;;  %vm325_vm3 = vcmask 5120  }
  0xc0   :  { %vm230_vm9 = vmor %vm210_vm7, %vm227_vm8 }
  0xc1   :  { %vm231_vm11 = vmxor %vm230_vm9, %vm449_vm10 }
  0xc2   :  { %vm237_vm13 = vmand %vm231_vm11, %vm236_vm12 }
  0xc3   :  { %v390_v49 = vsel %vm237_vm13, 1.0, %v451_v48 }
  0xc4   :  { %v241_v54 = vsel %vm240_vm15, %v390_v49, 0.0 }
  0xc9   :  { %v419_v60 = vpop.eup %418 }
  0xca   :  { %v269_v61 = vmul.f32 %v419_v60, %v590_v44  ;;  %v270_v62 = vmul.f32 %v419_v60, %v592_v45  ;;  %v271_v63 = vmul.f32 %v419_v60, %v594_v46 }
  0xcc   :  { %v272_v0 = vmul.f32 %v269_v61, %v548_v56  ;;  %v273_v38 = vmul.f32 %v270_v62, %v546_v53  ;;  %v275_v41 = vmul.f32 %v271_v63, %v578_v28 }
  0xce   :  { %v274_v40 = vadd.f32 %v273_v38, %v272_v0 }
  0xd0   :  { %v276_v42 = vadd.f32 %v275_v41, %v274_v40 }
  0xd2   :  { %vm277_vm14 = vcmp.gt.f32.partialorder %v276_v42, 0.0 }
  0xd3   :  { %v278_v44 = vsel %vm277_vm14, -1.0, %v450_v43 }
  0xd4   :  { %v280_v45 = vmul.f32 %v278_v44, %v270_v62  ;;  %v279_v46 = vmul.f32 %v278_v44, %v269_v61  ;;  %v281_v47 = vmul.f32 %v278_v44, %v271_v63 }
  0xd6   :  { %v286_v56 = vmul.f32 %v390_v49, %v280_v45  ;;  %v282_v50 = vmul.f32 %v390_v49, %v279_v46  ;;  %v290_v51 = vmul.f32 %v390_v49, %v281_v47 }
  0xd8   :  { %v287_v53 = vsel %vm240_vm15, %v286_v56, 0.0  ;;  %v283_v28 = vsel %vm240_vm15, %v282_v50, 0.0  ;;  %v291_v52 = vsel %vm240_vm15, %v290_v51, 0.0 }
  0xd9   :  { %288 = vadd.xlane.f32.xlu1 %v287_v53  ;;  %284 = vadd.xlane.f32.xlu0 %v283_v28 }
  0xdd   :  { %292 = vadd.xlane.f32.xlu0 %v291_v52 }
  0xe1   :  { %242 = vadd.xlane.f32.xlu0 %v241_v54 }
 0x166   :  { %v289_v55 = vpop.xlane.xlu1 %288  ;;  %v285_v57 = vpop.xlane.xlu0 %284 }
 0x167   :  { %v295_v58 = vmul.f32 %v289_v55, %v289_v55  ;;  %v294_v1 = vmul.f32 %v285_v57, %v285_v57 }
 0x169   :  { %v296_v3 = vadd.f32 %v295_v58, %v294_v1 }
 0x16a   :  { %v293_v2 = vpop.xlane.xlu0 %292 }
 0x16b   :  { %v297_v4 = vmul.f32 %v293_v2, %v293_v2 }
 0x16d   :  { %v298_v5 = vadd.f32 %v297_v4, %v296_v3 }
 0x16e   :  { %v243_v23 = vpop.xlane.xlu0 %242 }
 0x16f   :  { %420 = vrsqrt.f32 %v298_v5  ;;  %vm301_vm0 = vcmp.eq.f32.partialorder %v298_v5, inf  ;;  %v304_v8 = vand.u32 2147483648, %v298_v5  ;;  %vm303_vm1 = vcmp.eq.f32.partialorder %v298_v5, 0.0 }
 0x170   :  { %vm321_vm2 = vcmp.ge.f32.partialorder %v243_v23, 2.0 }
 0x171   :  { %v391_v27 = vsel %vm321_vm2, 1.0, %v451_v48 }
 0x172   :  { %v338_v30 = vmul.f32 %v391_v27, %v243_v23 }
 0x174   :  { %v339_v15 = vsel %vm325_vm3, %v338_v30, 0.0 }
 0x179   :  { %v421_v6 = vpop.eup %420 }
 0x17a   :  { %v300_v7 = vmul.f32 %v421_v6, %v298_v5 }
 0x17c   :  { %v302_v9 = vsel %vm301_vm0, %v298_v5, %v300_v7 }
 0x17d   :  { %v305_v10 = vsel %vm303_vm1, %v304_v8, %v302_v9 }
 0x17e   :  { %v306_v11 = vadd.f32 1e-05, %v305_v10 }
 0x180   :  { %422 = vrcp.f32 %v306_v11 }
 0x18a   :  { %v423_v12 = vpop.eup %422 }
 0x18b   :  { %v310_v13 = vmul.f32 %v423_v12, %v293_v2  ;;  %v308_v14 = vmul.f32 %v423_v12, %v285_v57  ;;  %v309_v17 = vmul.f32 %v423_v12, %v289_v55 }
 0x18d   :  { %v311_v18 = vmul.f32 %v308_v14, %v279_v46  ;;  %v312_v22 = vmul.f32 %v309_v17, %v280_v45  ;;  %v314_v19 = vmul.f32 %v310_v13, %v281_v47 }
 0x18f   :  { %v313_v24 = vadd.f32 %v312_v22, %v311_v18 }
 0x191   :  { %v315_v25 = vadd.f32 %v314_v19, %v313_v24 }
 0x193   :  { %v316_v26 = vsub.f32 1.0, %v315_v25 }
 0x195   :  { %v317_v29 = vmul.f32 %v390_v49, %v316_v26 }
 0x197   :  { %v318_v33 = vsel %vm240_vm15, %v317_v29, 0.0 }
 0x198   :  { %319 = vadd.xlane.f32.xlu1 %v318_v33 }
 0x19c   :  { %340 = vadd.xlane.f32.xlu1 %v339_v15 }
 0x225   :  { %v320_v16 = vpop.xlane.xlu1 %319 }
 0x226   :  { %v324_v20 = vmul.f32 %v391_v27, %v320_v16 }
 0x228   :  { %v326_v21 = vsel %vm325_vm3, %v324_v20, 0.0 }
 0x229   :  { %327 = vadd.xlane.f32.xlu0 %v326_v21  ;;  %v341_v31 = vpop.xlane.xlu1 %340 }
 0x22a   :  { %v342_v32 = vrot.slane %v341_v31, 4 }
 0x22c   :  { %v343_v34 = vadd.f32 %v342_v32, %v341_v31 }
 0x22e   :  { %v344_v35 = vrot.slane %v343_v34, 2 }
 0x230   :  { %v345_v60 = vadd.f32 %v344_v35, %v343_v34 }
 0x232   :  { %v346_v63 = vrot.slane %v345_v60, 1 }
 0x234   :  { %v347_v39 = vadd.f32 %v346_v63, %v345_v60 }
 0x2b6   :  { %v328_v36 = vpop.xlane.xlu0 %327 }
 0x2b7   :  { %v329_v59 = vrot.slane %v328_v36, 4 }
 0x2b9   :  { %v330_v37 = vadd.f32 %v329_v59, %v328_v36 }
 0x2bb   :  { %v331_v61 = vrot.slane %v330_v37, 2 }
 0x2bd   :  { %v332_v62 = vadd.f32 %v331_v61, %v330_v37 }
 0x2bf   :  { %v333_v0 = vrot.slane %v332_v62, 1 }
 0x2c1   :  { %v334_v38 = vadd.f32 %v333_v0, %v332_v62 }
 0x2c3   :  { %392 = vpush %v334_v38 }
 0x2c4   :  { %394 = vpush %v347_v39 }
 0x2f4   :  { %s393_s4 = spop %392 }
 0x2f5   :  { %s395_s7 = spop %394  ;;  %337 = sst [smem:[#allocation2]] %s393_s4 }
 0x2f6   :  { %350 = sst [smem:[#allocation4]] %s395_s7 }
 0x2f7   :  { %433 = shalt.err (!%p430_p2)
}
 0x2f8   :  { %s452_s15 = smov [#allocation2]   ;;  %s434_s19 = scalar_lea.hbm %s670_s6, 16 }
 0x2f9   :  { %358 = dma.smem_to_hbm %s452_s15, 16, %s669_s5, [#allocation3]  }
 0x2fa   :  { %p435_p3 = scmp.ne.s32.totalorder %s670_s6, %s434_s19  ;;  %p438_p4 = scmp.lt.u32.totalorder %s434_s19, %s670_s6 }
 0x2fc   :  { %p440_p5 = pnand %p438_p4, %p435_p3 }
 0x2fe   :  { %443 = shalt.err (!%p440_p5)
}
 0x2ff   :  { %s453_s23 = smov [#allocation4]  }
 0x300   :  { %366 = dma.smem_to_hbm %s453_s23, 16, %s670_s6, [#allocation5]  }
 0x301   :  { %444 = dma.done.wait [#allocation3], 16  }
 0x302   :  { %445 = vsyncadd [#allocation3], 4294967280 }
 0x303   :  { %446 = dma.done.wait [#allocation5], 16  }
 0x304   :  { %447 = vsyncadd [#allocation5], 4294967280 }
 0x305   :  { %373 = sfence }
 0x306   :  { %374 = vsyncpa [#allocation3], 1 }
 0x307   :  { %375 = vsyncpa [#allocation5], 1 }

</bundles_post_ra>
